<compile_context>
chip_gen: v6e
topology: v6e:2x2x1
jax: 0.10.0
libtpu: 0.0.40
codegen_flags: <defaults>
</compile_context>

<pallas_src>
import jax
import jax.numpy as jnp
from jax.experimental import pallas as pl
from jax.experimental.pallas import tpu as pltpu

HIDDEN = 256


def _round_up(x, m):
    return (x + m - 1) // m * m


# ----------------------------------------------------------------------------- kernel


def _make_mlp_kernel(n_linear, compute_dtype):
    """kernel(x, w0, b0, ..., w_{L-1}, b_{L-1}, out): out = MLP(x), ReLU between layers."""

    def kernel(*refs):
        x_ref = refs[0]
        out_ref = refs[-1]
        params = refs[1:-1]

        h = x_ref[...].astype(compute_dtype)
        for l in range(n_linear):
            w = params[2 * l][...]                 # (fan_in, fan_out), compute_dtype
            b = params[2 * l + 1][...]             # (1, fan_out), f32 -- broadcasts over rows
            # MXU matmul with f32 accumulation; bias add stays in f32.
            h = jnp.dot(h, w, preferred_element_type=jnp.float32) + b
            if l < n_linear - 1:
                # ReLU in f32 (v5e-safe), then one cast for the next matmul's bf16 operand.
                h = jnp.maximum(h, 0.0).astype(compute_dtype)
        out_ref[...] = h.astype(out_ref.dtype)

    return kernel


# ------------------------------------------------------------------------ param setup


def init_discriminator_params(key, input_dim, output_dim, hidden=HIDDEN):
    """PyTorch-default-style init U(-1/sqrt(fan_in), 1/sqrt(fan_in)); W stored (fan_in, fan_out)."""
    sizes = [input_dim, hidden, hidden, hidden, output_dim]
    params = []
    for i in range(len(sizes) - 1):
        fan_in, fan_out = sizes[i], sizes[i + 1]
        key, kw, kb = jax.random.split(key, 3)
        bound = 1.0 / float(fan_in) ** 0.5
        w = jax.random.uniform(kw, (fan_in, fan_out), jnp.float32, -bound, bound)
        b = jax.random.uniform(kb, (fan_out,), jnp.float32, -bound, bound)
        params.append((w, b))
    return params


def prepare_discriminator_params(params, compute_dtype=jnp.bfloat16):
    """Hoisted per-call prep: bf16 weight cast + (1, fan_out) f32 bias reshape. Do this once."""
    flat = []
    for w, b in params:
        flat.append(jnp.asarray(w, compute_dtype))               # bf16 matmul operand
        flat.append(jnp.asarray(b, jnp.float32).reshape(1, -1))  # f32 bias, stays resident
    return tuple(flat)


# --------------------------------------------------------------------------- wrapper


def _choose_tile_rows(batch, tile_rows):
    """Row-tile size: big by default, multiple of 8, and >=2 tiles when the batch allows
    so v7x's two TensorCores both get work from the 'parallel' grid axis."""
    b8 = _round_up(batch, 8)
    t = max(8, _round_up(tile_rows, 8))
    t = min(t, b8)
    if b8 >= 16 and b8 <= t:
        t = _round_up((b8 + 1) // 2, 8)
    return t


def _resident_spec(shape):
    """Constant-index, single-buffered BlockSpec for VMEM-resident weights/biases."""
    try:
        return pl.BlockSpec(shape, lambda i: (0, 0), pipeline_mode=pl.Buffered(1))
    except TypeError:
        # Older jax without BlockSpec.pipeline_mode: fall back to default buffering.
        return pl.BlockSpec(shape, lambda i: (0, 0))


def discriminator_forward_prepared(x, flat_params, *, tile_rows=512,
                                   compute_dtype=jnp.bfloat16):
    """Pallas forward given already-prepared (bf16 W, (1,N) f32 b) flat params."""
    B, in_dim = x.shape
    n_linear = len(flat_params) // 2
    out_dim = flat_params[-2].shape[1]

    t = _choose_tile_rows(B, tile_rows)
    B_pad = _round_up(B, t)
    if B_pad != B:
        x = jnp.pad(x, ((0, B_pad - B), (0, 0)))

    grid = (B_pad // t,)

    # Input row tile: last dim equals the full array dim, so no lane padding needed.
    in_specs = [pl.BlockSpec((t, in_dim), lambda i: (i, 0))]
    for a in flat_params:
        in_specs.append(_resident_spec(a.shape))
    # Unpadded output: (t, out_dim) block; last dim equals full array dim -> legal,
    # and HBM writeback is out_dim columns instead of a 128-lane zero-padded slab.
    out_specs = pl.BlockSpec((t, out_dim), lambda i: (i, 0))

    # Advisory cost estimate for XLA's scheduler.
    flops = 0
    for l in range(n_linear):
        w = flat_params[2 * l]
        flops += 2 * B_pad * w.shape[0] * w.shape[1]
    bytes_accessed = (
        x.size * x.dtype.itemsize
        + sum(a.size * a.dtype.itemsize for a in flat_params)
        + B_pad * out_dim * 4
    )

    out = pl.pallas_call(
        _make_mlp_kernel(n_linear, compute_dtype),
        out_shape=jax.ShapeDtypeStruct((B_pad, out_dim), jnp.float32),
        grid_spec=pltpu.PrefetchScalarGridSpec(
            num_scalar_prefetch=0,
            grid=grid,
            in_specs=in_specs,
            out_specs=out_specs,
        ),
        compiler_params=pltpu.CompilerParams(
            dimension_semantics=("parallel",),
            vmem_limit_bytes=32 * 1024 * 1024,
        ),
        cost_estimate=pl.CostEstimate(
            flops=int(flops), transcendentals=0, bytes_accessed=int(bytes_accessed)
        ),
    )(x, *flat_params)

    return out[:B]


def make_discriminator_forward(params, *, tile_rows=512, compute_dtype=jnp.bfloat16):
    """Prepare weights once and return a jitted forward(x) closure (hoisted prep)."""
    flat = prepare_discriminator_params(params, compute_dtype)

    @jax.jit
    def forward(x):
        return discriminator_forward_prepared(
            x, flat, tile_rows=tile_rows, compute_dtype=compute_dtype)

    return forward


def discriminator_forward(x, params, *, tile_rows=512, compute_dtype=jnp.bfloat16):
    """One-shot convenience wrapper (prefers make_discriminator_forward for repeated calls)."""
    flat = prepare_discriminator_params(params, compute_dtype)
    return discriminator_forward_prepared(
        x, flat, tile_rows=tile_rows, compute_dtype=compute_dtype)


# -------------------------------------------------------------------------- reference


def _reference_forward(x, params, compute_dtype=jnp.bfloat16):
    """Pure-JAX reference with the same bf16-matmul / f32-accumulate numerics.
    (bf16 operands are a deliberate deviation from PyTorch f32 Linear; tolerance below
    is tied to that choice.)"""
    h = x.astype(compute_dtype)
    for l, (w, b) in enumerate(params):
        h = jnp.dot(h, w.astype(compute_dtype), preferred_element_type=jnp.float32) + b
        if l < len(params) - 1:
            h = jnp.maximum(h, 0.0).astype(compute_dtype)
    return h


if __name__ == "__main__":
    input_dim, output_dim = 16, 1

    key = jax.random.PRNGKey(0)
    kx, kx2, kp = jax.random.split(key, 3)
    params = init_discriminator_params(kp, input_dim, output_dim)

    forward = make_discriminator_forward(params)  # default tile_rows=512, clamped by batch

    # Check 1: batch=64 -> two 32-row tiles (exercises the pipelined, 2-tile grid).
    x = jax.random.normal(kx, (64, input_dim), jnp.float32)
    out = jax.block_until_ready(forward(x))
    assert out.shape == (64, output_dim), out.shape
    ref = _reference_forward(x, params)
    assert jnp.allclose(out, ref, atol=1e-4, rtol=1e-4), "mismatch vs reference (B=64)"

    # Check 2: batch=50 -> exercises row padding + slice-back.
    x2 = jax.random.normal(kx2, (50, input_dim), jnp.float32)
    out2 = jax.block_until_ready(forward(x2))
    assert out2.shape == (50, output_dim), out2.shape
    ref2 = _reference_forward(x2, params)
    assert jnp.allclose(out2, ref2, atol=1e-4, rtol=1e-4), "mismatch vs reference (B=50)"

    print("KERNEL_OK")
</pallas_src>

<mosaic_0001>
module attributes {stable_mosaic.version = 11 : i64} {
  func.func @kernel(%arg0: i32, %arg1: memref<32x16xf32, #tpu.memory_space<vmem>>, %arg2: memref<16x256xbf16, #tpu.memory_space<vmem>>, %arg3: memref<1x256xf32, #tpu.memory_space<vmem>>, %arg4: memref<256x256xbf16, #tpu.memory_space<vmem>>, %arg5: memref<1x256xf32, #tpu.memory_space<vmem>>, %arg6: memref<256x256xbf16, #tpu.memory_space<vmem>>, %arg7: memref<1x256xf32, #tpu.memory_space<vmem>>, %arg8: memref<256x1xbf16, #tpu.memory_space<vmem>>, %arg9: memref<1x1xf32, #tpu.memory_space<vmem>>, %arg10: memref<32x1xf32, #tpu.memory_space<vmem>>) attributes {dimension_semantics = [#tpu.dimension_semantics<parallel>], iteration_bounds = array<i64: 2>, scalar_prefetch = 0 : i64, scratch_operands = 0 : i64, tpu.core_type = #tpu.core_type<tc>, window_params = [{transform_indices = @transform_0, window_bounds = array<i64: 32, 16>}, {pipeline_mode = #tpu.pipeline_mode<synchronous>, transform_indices = @transform_1, window_bounds = array<i64: 16, 256>}, {pipeline_mode = #tpu.pipeline_mode<synchronous>, transform_indices = @transform_2, window_bounds = array<i64: 1, 256>}, {pipeline_mode = #tpu.pipeline_mode<synchronous>, transform_indices = @transform_3, window_bounds = array<i64: 256, 256>}, {pipeline_mode = #tpu.pipeline_mode<synchronous>, transform_indices = @transform_4, window_bounds = array<i64: 1, 256>}, {pipeline_mode = #tpu.pipeline_mode<synchronous>, transform_indices = @transform_5, window_bounds = array<i64: 256, 256>}, {pipeline_mode = #tpu.pipeline_mode<synchronous>, transform_indices = @transform_6, window_bounds = array<i64: 1, 256>}, {pipeline_mode = #tpu.pipeline_mode<synchronous>, transform_indices = @transform_7, window_bounds = array<i64: 256, 1>}, {pipeline_mode = #tpu.pipeline_mode<synchronous>, transform_indices = @transform_8, window_bounds = array<i64: 1, 1>}, {transform_indices = @transform_9, window_bounds = array<i64: 32, 1>}]} {
    %c0 = arith.constant 0 : index
    %c0_0 = arith.constant 0 : index
    %0 = vector.load %arg1[%c0, %c0_0] : memref<32x16xf32, #tpu.memory_space<vmem>>, vector<32x16xf32>
    %1 = arith.truncf %0 : vector<32x16xf32> to vector<32x16xbf16>
    %c0_1 = arith.constant 0 : index
    %c0_2 = arith.constant 0 : index
    %2 = vector.load %arg2[%c0_1, %c0_2] : memref<16x256xbf16, #tpu.memory_space<vmem>>, vector<16x256xbf16>
    %c0_3 = arith.constant 0 : index
    %c0_4 = arith.constant 0 : index
    %3 = vector.load %arg3[%c0_3, %c0_4] : memref<1x256xf32, #tpu.memory_space<vmem>>, vector<1x256xf32>
    %cst = arith.constant dense<0.000000e+00> : vector<32x256xf32>
    %4 = tpu.matmul %1, %2, %cst {dimension_numbers = #tpu.dot_dimension_numbers<[1], [0], [0], [1], [0, 0, 1, 1], [], []>} : vector<32x16xbf16>, vector<16x256xbf16>, vector<32x256xf32> -> vector<32x256xf32>
    %5 = vector.broadcast %3 : vector<1x256xf32> to vector<32x256xf32>
    %6 = arith.addf %4, %5 : vector<32x256xf32>
    %cst_5 = arith.constant 0.000000e+00 : f32
    %7 = vector.broadcast %cst_5 : f32 to vector<32x256xf32>
    %8 = arith.maximumf %6, %7 : vector<32x256xf32>
    %9 = arith.truncf %8 : vector<32x256xf32> to vector<32x256xbf16>
    %c0_6 = arith.constant 0 : index
    %c0_7 = arith.constant 0 : index
    %10 = vector.load %arg4[%c0_6, %c0_7] : memref<256x256xbf16, #tpu.memory_space<vmem>>, vector<256x256xbf16>
    %c0_8 = arith.constant 0 : index
    %c0_9 = arith.constant 0 : index
    %11 = vector.load %arg5[%c0_8, %c0_9] : memref<1x256xf32, #tpu.memory_space<vmem>>, vector<1x256xf32>
    %cst_10 = arith.constant dense<0.000000e+00> : vector<32x256xf32>
    %12 = tpu.matmul %9, %10, %cst_10 {dimension_numbers = #tpu.dot_dimension_numbers<[1], [0], [0], [1], [0, 0, 1, 1], [], []>} : vector<32x256xbf16>, vector<256x256xbf16>, vector<32x256xf32> -> vector<32x256xf32>
    %13 = vector.broadcast %11 : vector<1x256xf32> to vector<32x256xf32>
    %14 = arith.addf %12, %13 : vector<32x256xf32>
    %cst_11 = arith.constant 0.000000e+00 : f32
    %15 = vector.broadcast %cst_11 : f32 to vector<32x256xf32>
    %16 = arith.maximumf %14, %15 : vector<32x256xf32>
    %17 = arith.truncf %16 : vector<32x256xf32> to vector<32x256xbf16>
    %c0_12 = arith.constant 0 : index
    %c0_13 = arith.constant 0 : index
    %18 = vector.load %arg6[%c0_12, %c0_13] : memref<256x256xbf16, #tpu.memory_space<vmem>>, vector<256x256xbf16>
    %c0_14 = arith.constant 0 : index
    %c0_15 = arith.constant 0 : index
    %19 = vector.load %arg7[%c0_14, %c0_15] : memref<1x256xf32, #tpu.memory_space<vmem>>, vector<1x256xf32>
    %cst_16 = arith.constant dense<0.000000e+00> : vector<32x256xf32>
    %20 = tpu.matmul %17, %18, %cst_16 {dimension_numbers = #tpu.dot_dimension_numbers<[1], [0], [0], [1], [0, 0, 1, 1], [], []>} : vector<32x256xbf16>, vector<256x256xbf16>, vector<32x256xf32> -> vector<32x256xf32>
    %21 = vector.broadcast %19 : vector<1x256xf32> to vector<32x256xf32>
    %22 = arith.addf %20, %21 : vector<32x256xf32>
    %cst_17 = arith.constant 0.000000e+00 : f32
    %23 = vector.broadcast %cst_17 : f32 to vector<32x256xf32>
    %24 = arith.maximumf %22, %23 : vector<32x256xf32>
    %25 = arith.truncf %24 : vector<32x256xf32> to vector<32x256xbf16>
    %c0_18 = arith.constant 0 : index
    %c0_19 = arith.constant 0 : index
    %26 = vector.load %arg8[%c0_18, %c0_19] : memref<256x1xbf16, #tpu.memory_space<vmem>>, vector<256x1xbf16>
    %c0_20 = arith.constant 0 : index
    %c0_21 = arith.constant 0 : index
    %27 = vector.load %arg9[%c0_20, %c0_21] : memref<1x1xf32, #tpu.memory_space<vmem>>, vector<1x1xf32>
    %cst_22 = arith.constant dense<0.000000e+00> : vector<32x1xf32>
    %28 = tpu.matmul %25, %26, %cst_22 {dimension_numbers = #tpu.dot_dimension_numbers<[1], [0], [0], [1], [0, 0, 1, 1], [], []>} : vector<32x256xbf16>, vector<256x1xbf16>, vector<32x1xf32> -> vector<32x1xf32>
    %29 = vector.broadcast %27 : vector<1x1xf32> to vector<32x1xf32>
    %30 = arith.addf %28, %29 : vector<32x1xf32>
    %c0_23 = arith.constant 0 : index
    %c0_24 = arith.constant 0 : index
    %31 = vector.load %arg10[%c0_23, %c0_24] : memref<32x1xf32, #tpu.memory_space<vmem>>, vector<32x1xf32>
    tpu.vector_store %arg10[%c0_23, %c0_24], %30 {strides = array<i32>} : memref<32x1xf32, #tpu.memory_space<vmem>>, vector<32x1xf32>,
    return
  }
  func.func @transform_0(%arg0: i32) -> (i32, i32) {
    %c0_i32 = arith.constant 0 : i32
    %c0_i32_0 = arith.constant 0 : i32
    return %arg0, %c0_i32 : i32, i32
  }
  func.func @transform_1(%arg0: i32) -> (i32, i32) {
    %c0_i32 = arith.constant 0 : i32
    %c0_i32_0 = arith.constant 0 : i32
    %c0_i32_1 = arith.constant 0 : i32
    return %c0_i32, %c0_i32_0 : i32, i32
  }
  func.func @transform_2(%arg0: i32) -> (i32, i32) {
    %c0_i32 = arith.constant 0 : i32
    %c0_i32_0 = arith.constant 0 : i32
    %c0_i32_1 = arith.constant 0 : i32
    return %c0_i32, %c0_i32_0 : i32, i32
  }
  func.func @transform_3(%arg0: i32) -> (i32, i32) {
    %c0_i32 = arith.constant 0 : i32
    %c0_i32_0 = arith.constant 0 : i32
    %c0_i32_1 = arith.constant 0 : i32
    return %c0_i32, %c0_i32_0 : i32, i32
  }
  func.func @transform_4(%arg0: i32) -> (i32, i32) {
    %c0_i32 = arith.constant 0 : i32
    %c0_i32_0 = arith.constant 0 : i32
    %c0_i32_1 = arith.constant 0 : i32
    return %c0_i32, %c0_i32_0 : i32, i32
  }
  func.func @transform_5(%arg0: i32) -> (i32, i32) {
    %c0_i32 = arith.constant 0 : i32
    %c0_i32_0 = arith.constant 0 : i32
    %c0_i32_1 = arith.constant 0 : i32
    return %c0_i32, %c0_i32_0 : i32, i32
  }
  func.func @transform_6(%arg0: i32) -> (i32, i32) {
    %c0_i32 = arith.constant 0 : i32
    %c0_i32_0 = arith.constant 0 : i32
    %c0_i32_1 = arith.constant 0 : i32
    return %c0_i32, %c0_i32_0 : i32, i32
  }
  func.func @transform_7(%arg0: i32) -> (i32, i32) {
    %c0_i32 = arith.constant 0 : i32
    %c0_i32_0 = arith.constant 0 : i32
    %c0_i32_1 = arith.constant 0 : i32
    return %c0_i32, %c0_i32_0 : i32, i32
  }
  func.func @transform_8(%arg0: i32) -> (i32, i32) {
    %c0_i32 = arith.constant 0 : i32
    %c0_i32_0 = arith.constant 0 : i32
    %c0_i32_1 = arith.constant 0 : i32
    return %c0_i32, %c0_i32_0 : i32, i32
  }
  func.func @transform_9(%arg0: i32) -> (i32, i32) {
    %c0_i32 = arith.constant 0 : i32
    %c0_i32_0 = arith.constant 0 : i32
    return %arg0, %c0_i32 : i32, i32
  }
}

</mosaic_0001>

<bundles_post_ra>
// kernel: forward.1
= control target key start
LH: loop header
LB: loop body
LE: loop exit
PB: predicated region body
PF: predicated region fallthrough
CT: control target
= control target key end

     0   :  { %s1884_s0 = inlined_call_operand.vmem [shape: f32[64,16], index: 0, kind: input, shape index: {}]   ;;  %s1885_s1 = inlined_call_operand.vmem [shape: bf16[16,256], index: 1, kind: input, shape index: {}]   ;;  %s1886_s2 = inlined_call_operand.vmem [shape: f32[1,256], index: 2, kind: input, shape index: {}]   ;;  %s1887_s3 = inlined_call_operand.hbm [shape: bf16[256,256], index: 3, kind: input, shape index: {}]   ;;  %s1888_s4 = inlined_call_operand.vmem [shape: f32[1,256], index: 4, kind: input, shape index: {}]   ;;  %s1889_s5 = inlined_call_operand.hbm [shape: bf16[256,256], index: 5, kind: input, shape index: {}]   ;;  %s1890_s6 = inlined_call_operand.vmem [shape: f32[1,256], index: 6, kind: input, shape index: {}]   ;;  %s1891_s7 = inlined_call_operand.hbm [shape: bf16[256,1], index: 7, kind: input, shape index: {}]   ;;  %s1892_s8 = inlined_call_operand.<no memory space> [shape: f32[1,1], index: 8, kind: input, shape index: {}]   ;;  %s1893_s9 = inlined_call_operand.vmem [shape: f32[64,1], index: 9, kind: output, shape index: {}]  }
   0x1   :  { %v14_v0 = vstv %s1892_s8 }
   0x2   :  { %15 = vst [vmem:[#allocation2] sm:$0x1] %v14_v0 }
   0x3   :  { %16 = vsyncpa [#allocation4], 0 }
   0x4   :  { %17 = vsyncpa [#allocation6], 0  ;;  %s1759_s11 = smov 0  }
   0x5 LB: > { %s1299_s12 = sadd.s32 4294967295, %s1696_s11   ;;  %p1301_p0 = scmp.ge.s32.totalorder %s1696_s11, 1  ;;  %s1696_s11 = sphi %s1759_s11, %s23_s11  }
   0x6   : > { %p248_p1 = scmp.lt.s32.totalorder %s1696_s11, 3  ;;  %p1769_p2 = scmp.eq.s32.totalorder %s1299_s12, 0 }
   0x7   : > { %s1698_s14 = smov [#allocation5]   ;;  %s1699_s16 = smov [#allocation3]  }
   0x8   : > { %p1773_p3 = pnand %p1301_p0, %p248_p1  ;;  %s282_s15 = sshll.u32 %s1698_s14, 4  ;;  %s283_s15 = int_to_ptr.vmem [resolvable:$true] %s282_s15 }
   0x9   : > { %s266_s17 = sshll.u32 %s1699_s16, 4  ;;  %s1700_s19 = smov [#allocation7]   ;;  %s1779_s17 = int_to_ptr.vmem [resolvable:$true] %s266_s17 }
   0xa   : > { %p1457_p4 = pneg %p1773_p3  ;;  %s298_s20 = sshll.u32 %s1700_s19, 4  ;;  %s1787_s20 = int_to_ptr.vmem [resolvable:$true] %s298_s20 }
   0xb   : > { %s1615_s21 = scalar_lea.vmem %s283_s15, 4096  ;;  %p1623_p10 = scmp.lt.s32.totalorder %s283_s15, %s283_s15 }
   0xc   : > { %p1783_p5 = pnand %p1769_p2, %p1457_p4  ;;  %p1616_p7 = scmp.ne.s32.totalorder %s283_s15, %s1615_s21 }
   0xd   : > { %p1624_p11 = scmp.lt.s32.totalorder %s1615_s21, %s1615_s21 }
   0xe   : > { %p1606_p6 = pneg %p1783_p5 }
   0xf   : > { %p1625_p12 = por %p1624_p11, %p1623_p10 }
  0x10   : > { %p1618_p8 = pnand %p1616_p7, %p1606_p6 }
  0x12   : > { %p1619_p9 = pneg %p1618_p8 }
  0x14   : > { %p1626_p13 = pnand %p1625_p12, %p1619_p9 }
  0x16   : > { %1629 = shalt.err (!%p1626_p13)
}
  0x17   : > { %s1701_s22 = smov 128   ;;  %s1702_s23 = smov 8  }
  0x18   : > { %1463 = dma.hbm_to_vmem [thread:$0]  (!%p1783_p5), %s1889_s5, 4096, %s283_s15, [#allocation6], %s1701_s22, %s1701_s22, %s1702_s23  }
  0x19   : > { %s1641_s26 = scalar_lea.vmem %s1779_s17, 4096  ;;  %p1649_p7 = scmp.lt.s32.totalorder %s1779_s17, %s1779_s17 }
  0x1a   : > { %p1642_p0 = scmp.ne.s32.totalorder %s1779_s17, %s1641_s26  ;;  %p1650_p8 = scmp.lt.s32.totalorder %s1641_s26, %s1641_s26 }
  0x1c   : > { %p1644_p1 = pnand %p1642_p0, %p1606_p6  ;;  %p1651_p9 = por %p1650_p8, %p1649_p7 }
  0x1e   : > { %p1645_p4 = pneg %p1644_p1 }
  0x20   : > { %p1652_p10 = pnand %p1651_p9, %p1645_p4 }
  0x22   : > { %1655 = shalt.err (!%p1652_p10)
}
  0x23   : > { %1460 = dma.hbm_to_vmem [thread:$0]  (!%p1783_p5), %s1887_s3, 4096, %s1779_s17, [#allocation4], %s1701_s22, %s1701_s22, %s1702_s23  }
  0x24   : > { %s1667_s29 = scalar_lea.vmem %s1787_s20, 2048  ;;  %p1675_p0 = scmp.lt.s32.totalorder %s1787_s20, %s1787_s20 }
  0x25   : > { %p1668_p11 = scmp.ne.s32.totalorder %s1787_s20, %s1667_s29  ;;  %p1676_p1 = scmp.lt.s32.totalorder %s1667_s29, %s1667_s29 }
  0x27   : > { %p1670_p12 = pnand %p1668_p11, %p1606_p6  ;;  %p1677_p4 = por %p1676_p1, %p1675_p0 }
  0x29   : > { %p1671_p13 = pneg %p1670_p12 }
  0x2b   : > { %p1678_p7 = pnand %p1677_p4, %p1671_p13 }
  0x2d   : > { %1681 = shalt.err (!%p1678_p7)
}
  0x2e   : > { %s1703_s30 = smov 64   ;;  %s1704_s10 = smov 4  }
  0x2f   : > { %1466 = dma.hbm_to_vmem [thread:$0]  (!%p1783_p5), %s1891_s7, 2048, %s1787_s20, [#allocation6], %s1703_s30, %s1703_s30, %s1704_s10  }
  0x30   : > { %326 = sbr.rel (%p1773_p3) target bundleno = 895 (0x37f), region = 56 }
  0x35   : > { %1687 = dma.done.wait (%p1769_p2), [#allocation4], 4096  }
  0x36   : > { %1689 = vsyncadd (%p1769_p2), [#allocation4], 4294963200 }
  0x37   : > { %1691 = dma.done.wait (%p1769_p2), [#allocation6], 6144  }
  0x38   : > { %1693 = vsyncadd (%p1769_p2), [#allocation6], 4294961152  ;;  %s1310_s16 = sshll.u32 %s1299_s12, 2  ;;  %v1705_v1 = vmov 0   ;;  %v1489_v2 = vld [vmem:[%s1885_s1 + $0x4] ss:$8 sps:$4 sm:$0xff]  }
  0x39   : > { %452 = vmatprep.mubr.bf16.mxu0 %v1705_v1  ;;  %p371_p5 = scmp.lt.s32.totalorder %s1310_s16, 7  ;;  %v1491_v3 = vld [vmem:[%s1885_s1] ss:$8 sps:$4 sm:$0xff]   ;;  %434 = vmatprep.subr.bf16.mxu0 %v1489_v2  ;;  %vm413_vm0 = vcmask 130048   ;;  %v1494_v8 = vld [vmem:[#allocation3 + $0x70] ss:$8 sps:$4 sm:$0xff]  }
  0x3a   : > { %435 = vmatpush1.bf16.msra.mxu0 %v1491_v3  ;;  %v1492_v7 = vld [vmem:[#allocation3 + $0x74] ss:$8 sps:$4 sm:$0xff]   ;;  %v1495_v9 = vld [vmem:[#allocation3 + $0x64] ss:$8 sps:$4 sm:$0xff]   ;;  %v1497_v11 = vld [vmem:[#allocation3 + $0x60] ss:$8 sps:$4 sm:$0xff]  }
  0x3b   : > { %s1898_s16 = smov (!%p371_p5, %s1310_s16), 7  ;;  %689 = vmatprep.subr.bf16.mxu1 %v1492_v7  ;;  %v1498_v13 = vld [vmem:[#allocation3 + $0x54] ss:$8 sps:$4 sm:$0xff]   ;;  %v1500_v15 = vld [vmem:[#allocation3 + $0x50] ss:$8 sps:$4 sm:$0xff]   ;;  %vm1207_vm1 = vcmask 7168  }
  0x3c   : > { %s1311_s13 = sshll.u32 %s1898_s16, 3  ;;  %690 = vmatpush1.bf16.msra.mxu1 %v1494_v8  ;;  %v1501_v16 = vld [vmem:[#allocation3 + $0x44] ss:$8 sps:$4 sm:$0xff]   ;;  %v1503_v17 = vld [vmem:[#allocation3 + $0x40] ss:$8 sps:$4 sm:$0xff]  }
  0x3d   : > { %s374_s19 = scalar_lea.vmem %s1884_s0, %s1311_s13  ;;  %691 = vmatprep.subr.bf16.mxu1 %v1495_v9  ;;  %v1504_v18 = vld [vmem:[#allocation3 + $0x34] ss:$8 sps:$4 sm:$0xff]   ;;  %v1506_v19 = vld [vmem:[#allocation3 + $0x30] ss:$8 sps:$4 sm:$0xff]   ;;  %v1507_v20 = vld [vmem:[#allocation3 + $0x24] ss:$8 sps:$4 sm:$0xff]   ;;  %s380_s30 = scalar_lea.vmem %s1893_s9, %s1311_s13 }
  0x3e   : > { %v383_v4 = vld [vmem:[%s374_s19] sm:$0xff]  ;;  %v384_v5 = vld [vmem:[%s374_s19 + $0x8] sm:$0xff]  ;;  %v385_v10 = vld [vmem:[%s374_s19 + $0x10] sm:$0xff] }
  0x3f   : > { %v387_v6 = vpack.c.bf16 %v384_v5, %v383_v4  ;;  %v386_v12 = vld [vmem:[%s374_s19 + $0x18] sm:$0xff]  ;;  %v1509_v21 = vld [vmem:[#allocation3 + $0x20] ss:$8 sps:$4 sm:$0xff]   ;;  %v1513_v24 = vld [vmem:[#allocation3 + $0x4] ss:$8 sps:$4 sm:$0xff]   ;;  %v393_v4 = vlaneseq }
  0x40   : > { %v388_v14 = vpack.c.bf16 %v386_v12, %v385_v10  ;;  %692 = vmatpush1.bf16.msra.mxu1 %v1497_v11  ;;  %v1510_v22 = vld [vmem:[#allocation3 + $0x14] ss:$8 sps:$4 sm:$0xff]   ;;  %v1512_v23 = vld [vmem:[#allocation3 + $0x10] ss:$8 sps:$4 sm:$0xff]   ;;  %v1515_v25 = vld [vmem:[#allocation3] ss:$8 sps:$4 sm:$0xff]  }
  0x41   : > { %1316 = vmatmul.mubr.msk.bf16.vlgmr.msra.gmra.mxu0 %vm413_vm0, %v387_v6  ;;  %693 = vmatprep.subr.bf16.mxu1 %v1498_v13  ;;  %v1516_v26 = vld [vmem:[#allocation3 + $0xf4] ss:$8 sps:$4 sm:$0xff]   ;;  %v1518_v27 = vld [vmem:[#allocation3 + $0xf0] ss:$8 sps:$4 sm:$0xff]   ;;  %v1519_v28 = vld [vmem:[#allocation3 + $0xe4] ss:$8 sps:$4 sm:$0xff]  }
  0x42   : > { %462 = vmatprep.mubr.bf16.mxu0 %v1705_v1  ;;  %v1521_v29 = vld [vmem:[#allocation3 + $0xe0] ss:$8 sps:$4 sm:$0xff]   ;;  %v1522_v30 = vld [vmem:[#allocation3 + $0xd4] ss:$8 sps:$4 sm:$0xff]   ;;  %v1524_v31 = vld [vmem:[#allocation3 + $0xd0] ss:$8 sps:$4 sm:$0xff]  }
  0x43   : > { %v1525_v32 = vld [vmem:[#allocation3 + $0xc4] ss:$8 sps:$4 sm:$0xff]   ;;  %v1527_v33 = vld [vmem:[#allocation3 + $0xc0] ss:$8 sps:$4 sm:$0xff]   ;;  %v1528_v34 = vld [vmem:[#allocation3 + $0xb4] ss:$8 sps:$4 sm:$0xff]  }
  0x44   : > { %694 = vmatpush1.bf16.msra.mxu1 %v1500_v15  ;;  %v1530_v35 = vld [vmem:[#allocation3 + $0xb0] ss:$8 sps:$4 sm:$0xff]   ;;  %v1531_v36 = vld [vmem:[#allocation3 + $0xa4] ss:$8 sps:$4 sm:$0xff]   ;;  %v1533_v37 = vld [vmem:[#allocation3 + $0xa0] ss:$8 sps:$4 sm:$0xff]  }
  0x45   : > { %695 = vmatprep.subr.bf16.mxu1 %v1501_v16  ;;  %v1534_v38 = vld [vmem:[#allocation3 + $0x94] ss:$8 sps:$4 sm:$0xff]   ;;  %v1536_v39 = vld [vmem:[#allocation3 + $0x90] ss:$8 sps:$4 sm:$0xff]   ;;  %v1537_v40 = vld [vmem:[#allocation3 + $0x84] ss:$8 sps:$4 sm:$0xff]  }
  0x46   : > { %v1539_v41 = vld [vmem:[#allocation3 + $0x80] ss:$8 sps:$4 sm:$0xff]   ;;  %v1540_v42 = vld [vmem:[#allocation5 + $0x70] ss:$8 sps:$4 sm:$0xff]   ;;  %v1542_v43 = vld [vmem:[#allocation5 + $0x74] ss:$8 sps:$4 sm:$0xff]  }
  0x47   : > { %v1545_v44 = vld [vmem:[#allocation5 + $0x64] ss:$8 sps:$4 sm:$0xff]   ;;  %958 = vmatprep.subr.bf16.mxu0 %v1542_v43  ;;  %v1543_v45 = vld [vmem:[#allocation5 + $0x60] ss:$8 sps:$4 sm:$0xff]   ;;  %v1548_v46 = vld [vmem:[#allocation5 + $0x54] ss:$8 sps:$4 sm:$0xff]  }
  0x48   : > { %696 = vmatpush1.bf16.msra.mxu1 %v1503_v17  ;;  %959 = vmatpush1.bf16.msra.mxu0 %v1540_v42  ;;  %v1546_v47 = vld [vmem:[#allocation5 + $0x50] ss:$8 sps:$4 sm:$0xff]   ;;  %v1551_v48 = vld [vmem:[#allocation5 + $0x44] ss:$8 sps:$4 sm:$0xff]   ;;  %v1549_v49 = vld [vmem:[#allocation5 + $0x40] ss:$8 sps:$4 sm:$0xff]  }
  0x49   : > { %1317 = vmatmul.mubr.msk.bf16.gmra.mxu0 %vm413_vm0, %v388_v14  ;;  %697 = vmatprep.subr.bf16.mxu1 %v1504_v18  ;;  %v1554_v50 = vld [vmem:[#allocation5 + $0x34] ss:$8 sps:$4 sm:$0xff]   ;;  %v1552_v51 = vld [vmem:[#allocation5 + $0x30] ss:$8 sps:$4 sm:$0xff]   ;;  %v1557_v52 = vld [vmem:[#allocation5 + $0x24] ss:$8 sps:$4 sm:$0xff]  }
  0x4a   : > { %960 = vmatprep.subr.bf16.mxu0 %v1545_v44  ;;  %v1555_v53 = vld [vmem:[#allocation5 + $0x20] ss:$8 sps:$4 sm:$0xff]   ;;  %v1560_v54 = vld [vmem:[#allocation5 + $0x14] ss:$8 sps:$4 sm:$0xff]   ;;  %v1558_v55 = vld [vmem:[#allocation5 + $0x10] ss:$8 sps:$4 sm:$0xff]  }
  0x4b   : > { %v1563_v56 = vld [vmem:[#allocation5 + $0x4] ss:$8 sps:$4 sm:$0xff]   ;;  %v1561_v57 = vld [vmem:[#allocation5] ss:$8 sps:$4 sm:$0xff]   ;;  %v1566_v58 = vld [vmem:[#allocation5 + $0xf4] ss:$8 sps:$4 sm:$0xff]  }
  0x4c   : > { %698 = vmatpush1.bf16.msra.mxu1 %v1506_v19  ;;  %961 = vmatpush1.bf16.msra.mxu0 %v1543_v45  ;;  %v1564_v59 = vld [vmem:[#allocation5 + $0xf0] ss:$8 sps:$4 sm:$0xff]   ;;  %v1569_v60 = vld [vmem:[#allocation5 + $0xe4] ss:$8 sps:$4 sm:$0xff]   ;;  %v1567_v61 = vld [vmem:[#allocation5 + $0xe0] ss:$8 sps:$4 sm:$0xff]  }
  0x4d   : > { %699 = vmatprep.subr.bf16.mxu1 %v1507_v20  ;;  %962 = vmatprep.subr.bf16.mxu0 %v1548_v46  ;;  %v1572_v62 = vld [vmem:[#allocation5 + $0xd4] ss:$8 sps:$4 sm:$0xff]   ;;  %v1570_v63 = vld [vmem:[#allocation5 + $0xd0] ss:$8 sps:$4 sm:$0xff]   ;;  %v1575_v0 = vld [vmem:[#allocation5 + $0xc4] ss:$8 sps:$4 sm:$0xff]  }
  0x4e   : > { %v1573_v1 = vld [vmem:[#allocation5 + $0xc0] ss:$8 sps:$4 sm:$0xff]   ;;  %v1578_v2 = vld [vmem:[#allocation5 + $0xb4] ss:$8 sps:$4 sm:$0xff]   ;;  %v1576_v3 = vld [vmem:[#allocation5 + $0xb0] ss:$8 sps:$4 sm:$0xff]  }
  0x4f   : > { %v394_v5 = vshrl.u32 %v393_v4, 7  ;;  %v391_v8 = vld [vmem:[%s1886_s2] sm:$0x3]  ;;  %v1582_v42 = vld [vmem:[#allocation5 + $0x90] ss:$8 sps:$4 sm:$0xff]  }
  0x50   : > { %700 = vmatpush1.bf16.msra.mxu1 %v1509_v21  ;;  %963 = vmatpush1.bf16.msra.mxu0 %v1546_v47  ;;  %v1587_v43 = vld [vmem:[#allocation5 + $0x84] ss:$8 sps:$4 sm:$0xff]   ;;  %v1585_v44 = vld [vmem:[#allocation5 + $0x80] ss:$8 sps:$4 sm:$0xff]   ;;  %v1588_v45 = vld [vmem:[#allocation7 + $0x78] sm:$0xff]  }
  0x51   : > { %701 = vmatprep.subr.bf16.mxu1 %v1510_v22  ;;  %964 = vmatprep.subr.bf16.mxu0 %v1551_v48  ;;  %v1853_v6 = vsub.s32 1, %v394_v5  ;;  %v1855_v7 = vsub.s32 0, %v394_v5  ;;  %v1589_v46 = vld [vmem:[#allocation7 + $0x38] sm:$0xff]   ;;  %v1590_v47 = vld [vmem:[#allocation7 + $0x70] sm:$0xff]  }
  0x52   : > { %v1591_v48 = vld [vmem:[#allocation7 + $0x30] sm:$0xff]  }
  0x53   : > { %v400_v10 = vrot.slane %v391_v8, %v1853_v6  ;;  %v396_v11 = vrot.slane %v391_v8, %v1855_v7 }
  0x54   : > { %702 = vmatpush1.bf16.msra.mxu1 %v1512_v23  ;;  %965 = vmatpush1.bf16.msra.mxu0 %v1549_v49  ;;  %v1592_v49 = vld [vmem:[#allocation7 + $0x68] sm:$0xff]  }
  0x55   : > { %703 = vmatprep.subr.bf16.mxu1 %v1513_v24  ;;  %966 = vmatprep.subr.bf16.mxu0 %v1554_v50  ;;  %v1593_v50 = vld [vmem:[#allocation7 + $0x28] sm:$0xff]  }
  0x58   : > { %704 = vmatpush1.bf16.msra.mxu1 %v1515_v25  ;;  %967 = vmatpush1.bf16.msra.mxu0 %v1552_v51  ;;  %v1594_v51 = vld [vmem:[#allocation7 + $0x60] sm:$0xff]  }
  0x59   : > { %705 = vmatprep.subr.bf16.mxu1 %v1516_v26  ;;  %968 = vmatprep.subr.bf16.mxu0 %v1557_v52  ;;  %v1595_v52 = vld [vmem:[#allocation7 + $0x20] sm:$0xff]  }
  0x5c   : > { %706 = vmatpush2.bf16.msra.mxu1 %v1518_v27  ;;  %969 = vmatpush1.bf16.msra.mxu0 %v1555_v53  ;;  %v1596_v53 = vld [vmem:[#allocation7 + $0x58] sm:$0xff]  }
  0x5d   : > { %707 = vmatprep.subr.bf16.mxu1 %v1519_v28  ;;  %970 = vmatprep.subr.bf16.mxu0 %v1560_v54  ;;  %v1597_v54 = vld [vmem:[#allocation7 + $0x18] sm:$0xff]  }
  0x60   : > { %708 = vmatpush2.bf16.msra.mxu1 %v1521_v29  ;;  %971 = vmatpush1.bf16.msra.mxu0 %v1558_v55  ;;  %v517_v55 = vld [vmem:[%s1888_s4] sm:$0x3] }
  0x61   : > { %709 = vmatprep.subr.bf16.mxu1 %v1522_v30  ;;  %972 = vmatprep.subr.bf16.mxu0 %v1563_v56 }
  0x64   : > { %710 = vmatpush2.bf16.msra.mxu1 %v1524_v31  ;;  %973 = vmatpush1.bf16.msra.mxu0 %v1561_v57  ;;  %v526_v57 = vrot.slane %v517_v55, %v1853_v6 }
  0x65   : > { %711 = vmatprep.subr.bf16.mxu1 %v1525_v32  ;;  %974 = vmatprep.subr.bf16.mxu0 %v1566_v58  ;;  %v522_v58 = vrot.slane %v517_v55, %v1855_v7 }
  0x68   : > { %712 = vmatpush2.bf16.msra.mxu1 %v1527_v33  ;;  %975 = vmatpush2.bf16.msra.mxu0 %v1564_v59 }
  0x69   : > { %713 = vmatprep.subr.bf16.mxu1 %v1528_v34  ;;  %976 = vmatprep.subr.bf16.mxu0 %v1569_v60 }
  0x6c   : > { %714 = vmatpush2.bf16.msra.mxu1 %v1530_v35  ;;  %977 = vmatpush2.bf16.msra.mxu0 %v1567_v61 }
  0x6d   : > { %715 = vmatprep.subr.bf16.mxu1 %v1531_v36  ;;  %978 = vmatprep.subr.bf16.mxu0 %v1572_v62 }
  0x70   : > { %716 = vmatpush2.bf16.msra.mxu1 %v1533_v37  ;;  %979 = vmatpush2.bf16.msra.mxu0 %v1570_v63 }
  0x71   : > { %717 = vmatprep.subr.bf16.mxu1 %v1534_v38  ;;  %980 = vmatprep.subr.bf16.mxu0 %v1575_v0 }
  0x74   : > { %718 = vmatpush2.bf16.msra.mxu1 %v1536_v39  ;;  %981 = vmatpush2.bf16.msra.mxu0 %v1573_v1  ;;  %v1581_v39 = vld [vmem:[#allocation5 + $0xa4] ss:$8 sps:$4 sm:$0xff]  }
  0x75   : > { %719 = vmatprep.subr.bf16.mxu1 %v1537_v40  ;;  %982 = vmatprep.subr.bf16.mxu0 %v1578_v2  ;;  %v1579_v40 = vld [vmem:[#allocation5 + $0xa0] ss:$8 sps:$4 sm:$0xff]  }
  0x78   : > { %720 = vmatpush2.bf16.msra.mxu1 %v1539_v41  ;;  %983 = vmatpush2.bf16.msra.mxu0 %v1576_v3  ;;  %v1584_v41 = vld [vmem:[#allocation5 + $0x94] ss:$8 sps:$4 sm:$0xff]  }
  0x79   : > { %984 = vmatprep.subr.bf16.mxu0 %v1581_v39  ;;  %1429 = vmatprep.subr.bf16.mxu1 %v1588_v45 }
  0x7c   : > { %985 = vmatpush2.bf16.msra.mxu0 %v1579_v40 }
  0x7d   : > { %986 = vmatprep.subr.bf16.mxu0 %v1584_v41 }
  0x80   : > { %987 = vmatpush2.bf16.msra.mxu0 %v1582_v42 }
  0x81   : > { %988 = vmatprep.subr.bf16.mxu0 %v1587_v43 }
  0x84   : > { %989 = vmatpush2.bf16.msra.mxu0 %v1585_v44 }
  0x85   : > { %1401 = vmatprep.subr.bf16.mxu0 %v1588_v45 }
 0x101   : > { %v454_v9 = vpop.f32.mrf.mxu0 }
 0x102   : > { %v455_v16 = vadd.f32 %v454_v9, %v396_v11 }
 0x103   : > { %v456_v12 = vpop.f32.mrf.mxu0 }
 0x104   : > { %v457_v14 = vadd.f32 %v456_v12, %v400_v10  ;;  %v473_v23 = vmax.f32 %v455_v16, 0.0 }
 0x105   : > { %v458_v13 = vpop.f32.mrf.mxu0 }
 0x106   : > { %v459_v15 = vadd.f32 %v458_v13, %v396_v11  ;;  %v474_v21 = vmax.f32 %v457_v14, 0.0 }
 0x107   : > { %v460_v17 = vpop.f32.mrf.mxu0 }
 0x108   : > { %v461_v18 = vadd.f32 %v460_v17, %v400_v10  ;;  %v475_v19 = vmax.f32 %v459_v15, 0.0 }
 0x109   : > { %v464_v20 = vpop.f32.mrf.mxu0 }
 0x10a   : > { %v476_v22 = vmax.f32 %v461_v18, 0.0  ;;  %v481_v26 = vpack.c.bf16 %v475_v19, %v473_v23  ;;  %v465_v30 = vadd.f32 %v464_v20, %v396_v11 }
 0x10b   : > { %v466_v24 = vpop.f32.mrf.mxu0 }
 0x10c   : > { %v482_v25 = vpack.c.bf16 %v476_v22, %v474_v21  ;;  %v467_v28 = vadd.f32 %v466_v24, %v400_v10  ;;  %v477_v36 = vmax.f32 %v465_v30, 0.0  ;;  %v1598_v24 = vld [vmem:[#allocation7 + $0x50] sm:$0xff]   ;;  %v786_v30 = vld [vmem:[%s1890_s6] sm:$0x3] }
 0x10d   : > { %v468_v27 = vpop.f32.mrf.mxu0 }
 0x10e   : > { %v469_v29 = vadd.f32 %v468_v27, %v396_v11  ;;  %721 = vmatprep.mubr.bf16.mxu1 %v482_v25  ;;  %v478_v34 = vmax.f32 %v467_v28, 0.0  ;;  %v1599_v25 = vld [vmem:[#allocation7 + $0x10] sm:$0xff]   ;;  %v1601_v27 = vld [vmem:[#allocation7 + $0x8] sm:$0xff]   ;;  %v1602_v28 = vld [vmem:[#allocation7 + $0x40] sm:$0xff]  }
 0x10f   : > { %v470_v31 = vpop.f32.mrf.mxu0  ;;  %722 = vmatmul.mubr.bf16.vlgmr.msra.gmra.mxu1 %v481_v26  ;;  %v1600_v26 = vld [vmem:[#allocation7 + $0x48] sm:$0xff]  }
 0x110   : > { %v471_v32 = vadd.f32 %v470_v31, %v400_v10  ;;  %v479_v33 = vmax.f32 %v469_v29, 0.0  ;;  %1437 = vmatpush3.bf16.msra.mxu1 %v1589_v46  ;;  %v1603_v29 = vld [vmem:[#allocation7] sm:$0xff]  }
 0x111   : > { %1430 = vmatprep.subr.bf16.mxu1 %v1590_v47 }
 0x112   : > { %v480_v35 = vmax.f32 %v471_v32, 0.0  ;;  %v483_v38 = vpack.c.bf16 %v479_v33, %v477_v36  ;;  %v795_v32 = vrot.slane %v786_v30, %v1853_v6  ;;  %v791_v33 = vrot.slane %v786_v30, %v1855_v7 }
 0x114   : > { %v484_v37 = vpack.c.bf16 %v480_v35, %v478_v34  ;;  %1438 = vmatpush3.bf16.msra.mxu1 %v1591_v48 }
 0x115   : > { %1431 = vmatprep.subr.bf16.mxu1 %v1592_v49 }
 0x116   : > { %731 = vmatprep.mubr.bf16.mxu1 %v484_v37 }
 0x117   : > { %732 = vmatmul.mubr.bf16.gmra.mxu1 %v483_v38 }
 0x118   : > { %1439 = vmatpush3.bf16.msra.mxu1 %v1593_v50 }
 0x119   : > { %1432 = vmatprep.subr.bf16.mxu1 %v1594_v51 }
 0x11c   : > { %1440 = vmatpush3.bf16.msra.mxu1 %v1595_v52 }
 0x11d   : > { %1433 = vmatprep.subr.bf16.mxu1 %v1596_v53 }
 0x120   : > { %1441 = vmatpush3.bf16.msra.mxu1 %v1597_v54 }
 0x121   : > { %1434 = vmatprep.subr.bf16.mxu1 %v1598_v24 }
 0x124   : > { %1442 = vmatpush3.bf16.msra.mxu1 %v1599_v25 }
 0x125   : > { %1435 = vmatprep.subr.bf16.mxu1 %v1600_v26 }
 0x128   : > { %1443 = vmatpush3.bf16.msra.mxu1 %v1601_v27 }
 0x129   : > { %1436 = vmatprep.subr.bf16.mxu1 %v1602_v28 }
 0x12c   : > { %1444 = vmatpush3.bf16.msra.mxu1 %v1603_v29 }
 0x1cf   : > { %v723_v56 = vpop.f32.mrf.mxu1 }
 0x1d0   : > { %v724_v63 = vadd.f32 %v723_v56, %v522_v58 }
 0x1d1   : > { %v725_v59 = vpop.f32.mrf.mxu1 }
 0x1d2   : > { %v726_v61 = vadd.f32 %v725_v59, %v526_v57  ;;  %v742_v8 = vmax.f32 %v724_v63, 0.0 }
 0x1d3   : > { %v727_v60 = vpop.f32.mrf.mxu1 }
 0x1d4   : > { %v728_v62 = vadd.f32 %v727_v60, %v522_v58  ;;  %v743_v4 = vmax.f32 %v726_v61, 0.0  ;;  %v1382_v60 = vld [vmem:[#allocation2] ss:$0 sm:$0xff] }
 0x1d5   : > { %v729_v0 = vpop.f32.mrf.mxu1 }
 0x1d6   : > { %v730_v1 = vadd.f32 %v729_v0, %v526_v57  ;;  %v744_v2 = vmax.f32 %v728_v62, 0.0 }
 0x1d7   : > { %v733_v3 = vpop.f32.mrf.mxu1 }
 0x1d8   : > { %v745_v5 = vmax.f32 %v730_v1, 0.0  ;;  %v750_v11 = vpack.c.bf16 %v744_v2, %v742_v8  ;;  %v734_v15 = vadd.f32 %v733_v3, %v522_v58 }
 0x1d9   : > { %v735_v9 = vpop.f32.mrf.mxu1 }
 0x1da   : > { %v751_v10 = vpack.c.bf16 %v745_v5, %v743_v4  ;;  %v736_v13 = vadd.f32 %v735_v9, %v526_v57  ;;  %v746_v21 = vmax.f32 %v734_v15, 0.0 }
 0x1db   : > { %v737_v12 = vpop.f32.mrf.mxu1 }
 0x1dc   : > { %v738_v14 = vadd.f32 %v737_v12, %v522_v58  ;;  %990 = vmatprep.mubr.bf16.mxu0 %v751_v10  ;;  %v747_v19 = vmax.f32 %v736_v13, 0.0 }
 0x1dd   : > { %v739_v16 = vpop.f32.mrf.mxu1  ;;  %991 = vmatmul.mubr.bf16.vlgmr.msra.gmra.mxu0 %v750_v11 }
 0x1de   : > { %v740_v17 = vadd.f32 %v739_v16, %v526_v57  ;;  %1402 = vmatpush3.bf16.msra.mxu0 %v1589_v46  ;;  %v748_v18 = vmax.f32 %v738_v14, 0.0 }
 0x1df   : > { %1403 = vmatprep.subr.bf16.mxu0 %v1590_v47 }
 0x1e0   : > { %v749_v20 = vmax.f32 %v740_v17, 0.0  ;;  %v752_v23 = vpack.c.bf16 %v748_v18, %v746_v21 }
 0x1e2   : > { %v753_v22 = vpack.c.bf16 %v749_v20, %v747_v19  ;;  %1404 = vmatpush3.bf16.msra.mxu0 %v1591_v48 }
 0x1e3   : > { %1405 = vmatprep.subr.bf16.mxu0 %v1592_v49 }
 0x1e4   : > { %1000 = vmatprep.mubr.bf16.mxu0 %v753_v22 }
 0x1e5   : > { %1001 = vmatmul.mubr.bf16.gmra.mxu0 %v752_v23 }
 0x1e6   : > { %1406 = vmatpush3.bf16.msra.mxu0 %v1593_v50 }
 0x1e7   : > { %1407 = vmatprep.subr.bf16.mxu0 %v1594_v51 }
 0x1ea   : > { %1408 = vmatpush3.bf16.msra.mxu0 %v1595_v52 }
 0x1eb   : > { %1409 = vmatprep.subr.bf16.mxu0 %v1596_v53 }
 0x1ee   : > { %1410 = vmatpush3.bf16.msra.mxu0 %v1597_v54 }
 0x1ef   : > { %1411 = vmatprep.subr.bf16.mxu0 %v1598_v24 }
 0x1f2   : > { %1412 = vmatpush3.bf16.msra.mxu0 %v1599_v25 }
 0x1f3   : > { %1413 = vmatprep.subr.bf16.mxu0 %v1600_v26 }
 0x1f6   : > { %1414 = vmatpush3.bf16.msra.mxu0 %v1601_v27 }
 0x1f7   : > { %1415 = vmatprep.subr.bf16.mxu0 %v1602_v28 }
 0x1fa   : > { %1416 = vmatpush3.bf16.msra.mxu0 %v1603_v29 }
 0x29d   : > { %v992_v31 = vpop.f32.mrf.mxu0 }
 0x29e   : > { %v993_v38 = vadd.f32 %v992_v31, %v791_v33 }
 0x29f   : > { %v994_v34 = vpop.f32.mrf.mxu0 }
 0x2a0   : > { %v995_v36 = vadd.f32 %v994_v34, %v795_v32  ;;  %v1011_v45 = vmax.f32 %v993_v38, 0.0 }
 0x2a1   : > { %v996_v35 = vpop.f32.mrf.mxu0 }
 0x2a2   : > { %v997_v37 = vadd.f32 %v996_v35, %v791_v33  ;;  %v1012_v43 = vmax.f32 %v995_v36, 0.0 }
 0x2a3   : > { %v998_v39 = vpop.f32.mrf.mxu0 }
 0x2a4   : > { %v999_v40 = vadd.f32 %v998_v39, %v795_v32  ;;  %v1013_v41 = vmax.f32 %v997_v37, 0.0 }
 0x2a5   : > { %v1002_v42 = vpop.f32.mrf.mxu0 }
 0x2a6   : > { %v1014_v44 = vmax.f32 %v999_v40, 0.0  ;;  %v1019_v48 = vpack.c.bf16 %v1013_v41, %v1011_v45  ;;  %v1003_v7 = vadd.f32 %v1002_v42, %v791_v33 }
 0x2a7   : > { %v1004_v46 = vpop.f32.mrf.mxu0 }
 0x2a8   : > { %v1020_v47 = vpack.c.bf16 %v1014_v44, %v1012_v43  ;;  %v1005_v50 = vadd.f32 %v1004_v46, %v795_v32  ;;  %v1015_v56 = vmax.f32 %v1003_v7, 0.0 }
 0x2a9   : > { %v1006_v49 = vpop.f32.mrf.mxu0 }
 0x2aa   : > { %v1007_v6 = vadd.f32 %v1006_v49, %v791_v33  ;;  %1190 = vmatprep.mubr.bf16.mxu0 %v1020_v47  ;;  %v1016_v54 = vmax.f32 %v1005_v50, 0.0 }
 0x2ab   : > { %v1008_v51 = vpop.f32.mrf.mxu0  ;;  %1191 = vmatmul.mubr.bf16.vlgmr.msra.gmra.mxu0 %v1019_v48 }
 0x2ac   : > { %v1009_v52 = vadd.f32 %v1008_v51, %v795_v32  ;;  %v1017_v53 = vmax.f32 %v1007_v6, 0.0 }
 0x2ae   : > { %v1018_v55 = vmax.f32 %v1009_v52, 0.0  ;;  %v1021_v58 = vpack.c.bf16 %v1017_v53, %v1015_v56 }
 0x2b0   : > { %v1022_v57 = vpack.c.bf16 %v1018_v55, %v1016_v54 }
 0x2b2   : > { %1198 = vmatprep.mubr.bf16.mxu1 %v1022_v57 }
 0x2b3   : > { %1199 = vmatmul.mubr.bf16.vlgmr.msra.gmra.mxu1 %v1021_v58 }
 0x36b   : > { %v1417_v59 = vpop.f32.mrf.mxu0 }
 0x36d   : > { %v1418_v61 = vpop.f32.mrf.mxu0 }
 0x36e   : > { %v1419_v62 = vadd.f32 %v1418_v61, %v1417_v59 }
 0x36f   : > { %v1420_v63 = vpop.f32.mrf.mxu0 }
 0x370   : > { %v1193_v0 = vadd.f32 %v1419_v62, %v1382_v60 }
 0x371   : > { %v1421_v1 = vpop.f32.mrf.mxu0 }
 0x372   : > { %1208 = vst.msk [vmem:[%s380_s30] sm:$0xff] %vm1207_vm1, %v1193_v0  ;;  %v1422_v2 = vadd.f32 %v1421_v1, %v1420_v63 }
 0x373   : > { %v1423_v3 = vpop.f32.mrf.mxu1 }
 0x374   : > { %v1196_v4 = vadd.f32 %v1422_v2, %v1382_v60 }
 0x375   : > { %v1424_v5 = vpop.f32.mrf.mxu1 }
 0x376   : > { %1209 = vst.msk [vmem:[%s380_s30 + $0x8] sm:$0xff] %vm1207_vm1, %v1196_v4  ;;  %v1425_v8 = vadd.f32 %v1424_v5, %v1423_v3 }
 0x377   : > { %v1426_v9 = vpop.f32.mrf.mxu1 }
 0x378   : > { %v1201_v10 = vadd.f32 %v1425_v8, %v1382_v60 }
 0x379   : > { %v1427_v11 = vpop.f32.mrf.mxu1 }
 0x37a   : > { %1210 = vst.msk [vmem:[%s380_s30 + $0x10] sm:$0xff] %vm1207_vm1, %v1201_v10  ;;  %v1428_v12 = vadd.f32 %v1427_v11, %v1426_v9 }
 0x37c   : > { %v1204_v13 = vadd.f32 %v1428_v12, %v1382_v60 }
 0x37e   : > { %1211 = vst.msk [vmem:[%s380_s30 + $0x18] sm:$0xff] %vm1207_vm1, %v1204_v13 }
 0x37f PF: > { %s23_s11 = sadd.s32 1, %s1696_s11  }
 0x380   : > { %p20_p2 = scmp.ge.s32.totalorder %s23_s11, 4  }
 0x382   :  { %22 = sbr.rel (!%p20_p2) target bundleno = 5 (0x5), region = 99 }
 0x387   :  { %1234 = vsyncpa [#allocation4], 1 }
 0x388   :  { %1236 = vsyncpa [#allocation4 + $0x1], 1 }
 0x389   :  { %1237 = vsyncpa [#allocation6], 1 }

</bundles_post_ra>
